<compile_context>
chip_gen: v5e
topology: v5e:2x2
jax: 0.10.0
libtpu: 0.0.40
codegen_flags: <defaults>
</compile_context>

<pallas_src>
import functools

import jax
import jax.numpy as jnp
from jax.experimental import pallas as pl
from jax.experimental.pallas import tpu as pltpu


def _disc_kernel(x_ref, p_ref, out_ref, *, in_dim, sz, h2, h3):
    """Whole MLP hot path for one (tile_b, in_dim) batch tile (batch-major)."""
    x = x_ref[...]                                   # (tile_b, in_dim)

    # Static slices into the packed parameter slab (one DMA'd operand).
    c = 0
    w1t = p_ref[0:in_dim, c:c + sz]; c += sz         # (in_dim, sz)  = fc1.weight.T
    b1  = p_ref[0:1,      c:c + sz]; c += sz         # (1, sz)
    w2t = p_ref[0:sz,     c:c + h2]; c += h2         # (sz, h2)      = fc2.weight.T
    b2  = p_ref[0:1,      c:c + h2]; c += h2         # (1, h2)
    w3t = p_ref[0:h2,     c:c + h3]; c += h3         # (h2, h3)      = fc3.weight.T
    b3  = p_ref[0:1,      c:c + h3]; c += h3         # (1, h3)
    w4r = p_ref[0:1,      c:c + h3]; c += h3         # (1, h3)       = fout.weight row
    b4  = p_ref[0:1,      c:c + 1]                   # (1, 1)

    # fc1: K = in_dim is tiny -> skip the MXU, unrolled VPU broadcast MAC.
    h = b1 + x[:, 0:1] * w1t[0:1, :]                 # (tile_b, sz)
    for k in range(1, in_dim):                       # static unroll (in_dim small)
        h = h + x[:, k:k + 1] * w1t[k:k + 1, :]
    h = jnp.maximum(h, 0.0)

    # fc2 / fc3 on the MXU with f32 accumulation.
    h = jnp.maximum(jnp.dot(h, w2t, preferred_element_type=jnp.float32) + b2, 0.0)
    h = jnp.maximum(jnp.dot(h, w3t, preferred_element_type=jnp.float32) + b3, 0.0)

    # fout: out_dim == 1 -> VPU multiply + XLU lane reduce (no MXU pass).
    logit = jnp.sum(h * w4r, axis=1, keepdims=True) + b4        # (tile_b, 1)
    out_ref[...] = jax.nn.sigmoid(logit).astype(out_ref.dtype)


def _pack_params(params):
    """Concatenate all weights/biases into one (sz, cols) f32 slab (1 DMA)."""
    w1, b1 = params["fc1"]
    w2, b2 = params["fc2"]
    w3, b3 = params["fc3"]
    w4, b4 = params["fout"]
    sz, in_dim = w1.shape
    h2, h3 = w2.shape[0], w3.shape[0]
    rows = sz

    def pad_rows(a):
        return jnp.pad(a.astype(jnp.float32), ((0, rows - a.shape[0]), (0, 0)))

    pieces = [
        pad_rows(w1.T),                    # (in_dim, sz)
        pad_rows(b1.reshape(1, sz)),
        pad_rows(w2.T),                    # (sz, h2)
        pad_rows(b2.reshape(1, h2)),
        pad_rows(w3.T),                    # (h2, h3)
        pad_rows(b3.reshape(1, h3)),
        pad_rows(w4.reshape(1, h3)),       # fout.weight as a row
        pad_rows(b4.reshape(1, 1)),
    ]
    return jnp.concatenate(pieces, axis=1)


@functools.partial(jax.jit, static_argnames=("tile_b",))
def discriminator_forward(x, params, *, tile_b=None):
    """x: [B, in_dim] float32. params: PyTorch layout (w=[out,in], b=[out])."""
    x = x.astype(jnp.float32)
    B, in_dim = x.shape
    w1, _ = params["fc1"]
    w2, _ = params["fc2"]
    w3, _ = params["fc3"]
    w4, _ = params["fout"]
    sz, h2, h3 = w1.shape[0], w2.shape[0], w3.shape[0]
    assert w4.shape[0] == 1

    if tile_b is None:
        # Lane-aligned tile, capped at 512: B<=512 -> one grid step, larger B
        # -> multiple "parallel" steps (shards across v7x's two TensorCores)
        # while the per-step working set stays a few hundred KB on all chips.
        tile_b = min(max(128, ((B + 127) // 128) * 128), 512)
    assert tile_b % 128 == 0, "tile_b must be lane-aligned"

    # Pad the batch up to a tile multiple instead of asserting divisibility.
    B_pad = ((B + tile_b - 1) // tile_b) * tile_b
    if B_pad != B:
        x = jnp.pad(x, ((0, B_pad - B), (0, 0)))

    slab = _pack_params(params)
    grid = (B_pad // tile_b,)
    kernel = functools.partial(_disc_kernel, in_dim=in_dim, sz=sz, h2=h2, h3=h3)

    flops = 2 * B_pad * (in_dim * sz + sz * h2 + h2 * h3 + h3)
    bytes_accessed = 4 * (B_pad * in_dim + slab.size + B_pad)
    cost = pl.CostEstimate(flops=flops, transcendentals=2 * B_pad,  # exp + recip
                           bytes_accessed=bytes_accessed)

    out = pl.pallas_call(
        kernel,
        out_shape=jax.ShapeDtypeStruct((B_pad, 1), jnp.float32),
        grid=grid,
        in_specs=[
            pl.BlockSpec((tile_b, in_dim), lambda i: (i, 0)),   # x batch tile
            pl.BlockSpec(slab.shape, lambda i: (0, 0)),         # packed params
        ],
        out_specs=pl.BlockSpec((tile_b, 1), lambda i: (i, 0)),
        compiler_params=pltpu.CompilerParams(
            dimension_semantics=("parallel",)),
        cost_estimate=cost,
    )(x, slab)

    return out if B_pad == B else out[:B]


def init_params(key, in_dim, sz):
    """PyTorch-style uniform(-1/sqrt(fan_in), 1/sqrt(fan_in)); weights [out, in]."""
    dims = [(in_dim, sz), (sz, sz // 2), (sz // 2, sz // 4), (sz // 4, 1)]
    names = ["fc1", "fc2", "fc3", "fout"]
    params = {}
    for name, (fi, fo) in zip(names, dims):
        key, kw, kb = jax.random.split(key, 3)
        bound = 1.0 / float(fi) ** 0.5
        w = jax.random.uniform(kw, (fo, fi), jnp.float32, -bound, bound)
        b = jax.random.uniform(kb, (fo,), jnp.float32, -bound, bound)
        params[name] = (w, b)
    return params


def _reference(x, params):
    h = x
    for name in ("fc1", "fc2", "fc3"):
        w, b = params[name]
        h = jnp.maximum(h @ w.T + b, 0.0)
    w, b = params["fout"]
    return jax.nn.sigmoid(h @ w.T + b)


if __name__ == "__main__":
    key = jax.random.PRNGKey(0)
    key, kx, kp = jax.random.split(key, 3)

    B, IN_DIM, SZ = 16, 2, 32   # toy-GAN 2D points, hidden size 32
    x = jax.random.normal(kx, (B, IN_DIM), jnp.float32)
    params = init_params(kp, IN_DIM, SZ)

    # Toy size: batch padded to one 128-wide tile, single grid step.
    out = jax.block_until_ready(discriminator_forward(x, params))
    ref = _reference(x, params)
    assert out.shape == (B, 1)
    assert jnp.allclose(out, ref, atol=1e-5, rtol=1e-5), "mismatch vs reference"

    # Larger, non-aligned batch: pads to 1024 and runs 2 parallel 512-row tiles.
    x_big = jax.random.normal(kx, (1000, IN_DIM), jnp.float32)
    out_big = jax.block_until_ready(discriminator_forward(x_big, params))
    ref_big = _reference(x_big, params)
    assert out_big.shape == (1000, 1)
    assert jnp.allclose(out_big, ref_big, atol=1e-5, rtol=1e-5), "mismatch vs reference (tiled)"

    print("KERNEL_OK")
</pallas_src>

<mosaic_0001>
module attributes {stable_mosaic.version = 11 : i64} {
  func.func @_disc_kernel(%arg0: i32, %arg1: memref<128x2xf32, #tpu.memory_space<vmem>>, %arg2: memref<32x121xf32, #tpu.memory_space<vmem>>, %arg3: memref<128x1xf32, #tpu.memory_space<vmem>>) attributes {dimension_semantics = [#tpu.dimension_semantics<parallel>], iteration_bounds = array<i64: 1>, scalar_prefetch = 0 : i64, scratch_operands = 0 : i64, tpu.core_type = #tpu.core_type<tc>, window_params = [{transform_indices = @transform_0, window_bounds = array<i64: 128, 2>}, {pipeline_mode = #tpu.pipeline_mode<synchronous>, transform_indices = @transform_1, window_bounds = array<i64: 32, 121>}, {transform_indices = @transform_2, window_bounds = array<i64: 128, 1>}]} {
    %c0 = arith.constant 0 : index
    %c0_0 = arith.constant 0 : index
    %0 = vector.load %arg1[%c0, %c0_0] : memref<128x2xf32, #tpu.memory_space<vmem>>, vector<128x2xf32>
    %c0_1 = arith.constant 0 : index
    %c0_2 = arith.constant 0 : index
    %1 = vector.load %arg2[%c0_1, %c0_2] : memref<32x121xf32, #tpu.memory_space<vmem>>, vector<2x32xf32>
    %c0_3 = arith.constant 0 : index
    %c32 = arith.constant 32 : index
    %2 = vector.load %arg2[%c0_3, %c32] : memref<32x121xf32, #tpu.memory_space<vmem>>, vector<1x32xf32>
    %c0_4 = arith.constant 0 : index
    %c64 = arith.constant 64 : index
    %3 = vector.load %arg2[%c0_4, %c64] : memref<32x121xf32, #tpu.memory_space<vmem>>, vector<32x16xf32>
    %c0_5 = arith.constant 0 : index
    %c80 = arith.constant 80 : index
    %4 = vector.load %arg2[%c0_5, %c80] : memref<32x121xf32, #tpu.memory_space<vmem>>, vector<1x16xf32>
    %c0_6 = arith.constant 0 : index
    %c96 = arith.constant 96 : index
    %5 = vector.load %arg2[%c0_6, %c96] : memref<32x121xf32, #tpu.memory_space<vmem>>, vector<16x8xf32>
    %c0_7 = arith.constant 0 : index
    %c104 = arith.constant 104 : index
    %6 = vector.load %arg2[%c0_7, %c104] : memref<32x121xf32, #tpu.memory_space<vmem>>, vector<1x8xf32>
    %c0_8 = arith.constant 0 : index
    %c112 = arith.constant 112 : index
    %7 = vector.load %arg2[%c0_8, %c112] : memref<32x121xf32, #tpu.memory_space<vmem>>, vector<1x8xf32>
    %c0_9 = arith.constant 0 : index
    %c120 = arith.constant 120 : index
    %8 = vector.load %arg2[%c0_9, %c120] : memref<32x121xf32, #tpu.memory_space<vmem>>, vector<1x1xf32>
    %9 = vector.extract_strided_slice %0 {offsets = [0, 0], sizes = [128, 1], strides = [1, 1]} : vector<128x2xf32> to vector<128x1xf32>
    %10 = vector.extract_strided_slice %1 {offsets = [0, 0], sizes = [1, 32], strides = [1, 1]} : vector<2x32xf32> to vector<1x32xf32>
    %11 = vector.broadcast %9 : vector<128x1xf32> to vector<128x32xf32>
    %12 = vector.broadcast %10 : vector<1x32xf32> to vector<128x32xf32>
    %13 = arith.mulf %11, %12 : vector<128x32xf32>
    %14 = vector.broadcast %2 : vector<1x32xf32> to vector<128x32xf32>
    %15 = arith.addf %14, %13 : vector<128x32xf32>
    %16 = vector.extract_strided_slice %0 {offsets = [0, 1], sizes = [128, 1], strides = [1, 1]} : vector<128x2xf32> to vector<128x1xf32>
    %17 = vector.extract_strided_slice %1 {offsets = [1, 0], sizes = [1, 32], strides = [1, 1]} : vector<2x32xf32> to vector<1x32xf32>
    %18 = vector.broadcast %16 : vector<128x1xf32> to vector<128x32xf32>
    %19 = vector.broadcast %17 : vector<1x32xf32> to vector<128x32xf32>
    %20 = arith.mulf %18, %19 : vector<128x32xf32>
    %21 = arith.addf %15, %20 : vector<128x32xf32>
    %cst = arith.constant 0.000000e+00 : f32
    %22 = vector.broadcast %cst : f32 to vector<128x32xf32>
    %23 = arith.maximumf %21, %22 : vector<128x32xf32>
    %cst_10 = arith.constant dense<0.000000e+00> : vector<128x16xf32>
    %24 = tpu.matmul %23, %3, %cst_10 {dimension_numbers = #tpu.dot_dimension_numbers<[1], [0], [0], [1], [0, 0, 1, 1], [], []>} : vector<128x32xf32>, vector<32x16xf32>, vector<128x16xf32> -> vector<128x16xf32>
    %25 = vector.broadcast %4 : vector<1x16xf32> to vector<128x16xf32>
    %26 = arith.addf %24, %25 : vector<128x16xf32>
    %cst_11 = arith.constant 0.000000e+00 : f32
    %27 = vector.broadcast %cst_11 : f32 to vector<128x16xf32>
    %28 = arith.maximumf %26, %27 : vector<128x16xf32>
    %cst_12 = arith.constant dense<0.000000e+00> : vector<128x8xf32>
    %29 = tpu.matmul %28, %5, %cst_12 {dimension_numbers = #tpu.dot_dimension_numbers<[1], [0], [0], [1], [0, 0, 1, 1], [], []>} : vector<128x16xf32>, vector<16x8xf32>, vector<128x8xf32> -> vector<128x8xf32>
    %30 = vector.broadcast %6 : vector<1x8xf32> to vector<128x8xf32>
    %31 = arith.addf %29, %30 : vector<128x8xf32>
    %cst_13 = arith.constant 0.000000e+00 : f32
    %32 = vector.broadcast %cst_13 : f32 to vector<128x8xf32>
    %33 = arith.maximumf %31, %32 : vector<128x8xf32>
    %34 = vector.broadcast %7 : vector<1x8xf32> to vector<128x8xf32>
    %35 = arith.mulf %33, %34 : vector<128x8xf32>
    %cst_14 = arith.constant dense<0.000000e+00> : vector<128xf32>
    %36 = vector.multi_reduction <add>, %35, %cst_14 [1] : vector<128x8xf32> to vector<128xf32>
    %37 = vector.shape_cast %36 : vector<128xf32> to vector<128x1xf32>
    %38 = vector.broadcast %8 : vector<1x1xf32> to vector<128x1xf32>
    %39 = arith.addf %37, %38 : vector<128x1xf32>
    %40 = arith.negf %39 : vector<128x1xf32>
    %41 = math.exp %40 : vector<128x1xf32>
    %cst_15 = arith.constant 1.000000e+00 : f32
    %42 = vector.broadcast %cst_15 : f32 to vector<128x1xf32>
    %43 = arith.addf %42, %41 : vector<128x1xf32>
    %44 = arith.divf %42, %43 : vector<128x1xf32>
    %c0_16 = arith.constant 0 : index
    %c0_17 = arith.constant 0 : index
    %45 = vector.load %arg3[%c0_16, %c0_17] : memref<128x1xf32, #tpu.memory_space<vmem>>, vector<128x1xf32>
    tpu.vector_store %arg3[%c0_16, %c0_17], %44 {strides = array<i32>} : memref<128x1xf32, #tpu.memory_space<vmem>>, vector<128x1xf32>,
    return
  }
  func.func @transform_0(%arg0: i32) -> (i32, i32) {
    %c0_i32 = arith.constant 0 : i32
    %c0_i32_0 = arith.constant 0 : i32
    return %arg0, %c0_i32 : i32, i32
  }
  func.func @transform_1(%arg0: i32) -> (i32, i32) {
    %c0_i32 = arith.constant 0 : i32
    %c0_i32_0 = arith.constant 0 : i32
    %c0_i32_1 = arith.constant 0 : i32
    return %c0_i32, %c0_i32_0 : i32, i32
  }
  func.func @transform_2(%arg0: i32) -> (i32, i32) {
    %c0_i32 = arith.constant 0 : i32
    %c0_i32_0 = arith.constant 0 : i32
    return %arg0, %c0_i32 : i32, i32
  }
}

</mosaic_0001>

<bundles_post_ra>
// kernel: discriminator_forward.1
= control target key start
LH: loop header
LB: loop body
LE: loop exit
PB: predicated region body
PF: predicated region fallthrough
CT: control target
= control target key end

     0   :  { %v1347_v0 = vmov 1   ;;  %v1348_v1 = vmov 0   ;;  %s1349_s13 = smov 32   ;;  %s1350_s19 = smov 64   ;;  %vm456_vm0 = vcmask 261120   ;;  %vm579_vm1 = vcmask 130048   ;;  %s1823_s0 = inlined_call_operand.vmem [shape: f32[128,2], index: 0, kind: input, shape index: {}]   ;;  %s1824_s1 = inlined_call_operand.vmem [shape: f32[32,121], index: 1, kind: input, shape index: {}]   ;;  %s1825_s2 = inlined_call_operand.vmem [shape: f32[128,1], index: 2, kind: output, shape index: {}]  }
   0x1   :  { %1245 = vset.pattern.permute.xlu0 %v1347_v0  ;;  %1246 = vset.pattern.permute.xlu1 %v1348_v1  ;;  %v19_v2 = vld [vmem:[%s1823_s0 + $0x40] sm:$0xff]  ;;  %v20_v4 = vld [vmem:[%s1823_s0 + $0x48] sm:$0xff]  ;;  %v22_v5 = vld [vmem:[%s1823_s0 + $0x58] sm:$0xff]  ;;  %s1351_s26 = smov 96   ;;  %s1352_s27 = smov 48   ;;  %vm728_vm2 = vcmask 64512  }
   0x2   :  { %v11_v3 = vld [vmem:[%s1823_s0] sm:$0xff]  ;;  %244 = vperm.xlu0 %1245, %v19_v2   ;;  %1248 = vset.pattern.permute.xlu2 %v1348_v1  ;;  %v16_v6 = vld [vmem:[%s1823_s0 + $0x28] sm:$0xff]  ;;  %v17_v8 = vld [vmem:[%s1823_s0 + $0x30] sm:$0xff]  ;;  %s1353_s28 = smov 24   ;;  %s1354_s29 = smov 16  }
   0x3   :  { %35 = vperm.xlu1 %1246, %v11_v3   ;;  %80 = vperm.xlu2 %1248, %v20_v4   ;;  %v12_v7 = vld [vmem:[%s1823_s0 + $0x8] sm:$0xff]  ;;  %v21_v9 = vld [vmem:[%s1823_s0 + $0x50] sm:$0xff]  ;;  %v14_v11 = vld [vmem:[%s1823_s0 + $0x18] sm:$0xff]  ;;  %s1355_s30 = smov 8  }
   0x4   :  { %v13_v10 = vld [vmem:[%s1823_s0 + $0x10] sm:$0xff]  ;;  %v15_v12 = vld [vmem:[%s1823_s0 + $0x20] sm:$0xff]  ;;  %v24_v14 = vld [vmem:[%s1823_s0 + $0x68] sm:$0xff] }
   0x5   :  { %v23_v13 = vld [vmem:[%s1823_s0 + $0x60] sm:$0xff]  ;;  %v25_v15 = vld [vmem:[%s1823_s0 + $0x70] sm:$0xff]  ;;  %v26_v16 = vld [vmem:[%s1823_s0 + $0x78] sm:$0xff] }
   0x6   :  { %v27_v18 = vld [vmem:[%s1824_s1] sm:$0x3]  ;;  %v18_v40 = vld [vmem:[%s1823_s0 + $0x38] sm:$0xff] }
   0x7   :  { %v1429_v19 = vperm.slane %v27_v18, 1  ;;  %v1431_v20 = vperm.slane %v27_v18, 0 }
   0xa   :  { %256 = vperm.xlu0 %1245, %v22_v5  }
   0xb   :  { %1247 = vset.pattern.permute.xlu1 %v1347_v0  ;;  %1249 = vset.pattern.permute.xlu2 %v1347_v0 }
   0xc   :  { %212 = vperm.xlu1 %1247, %v11_v3   ;;  %248 = vperm.xlu2 %1249, %v20_v4  }
  0x12   :  { %232 = vperm.xlu0 %1245, %v16_v6  }
  0x14   :  { %1250 = vset.pattern.permute.xlu1 %v1348_v1  ;;  %216 = vperm.xlu2 %1249, %v12_v7  }
  0x15   :  { %40 = vperm.xlu1 %1250, %v12_v7  }
  0x1a   :  { %236 = vperm.xlu0 %1245, %v17_v8  }
  0x1c   :  { %1252 = vset.pattern.permute.xlu2 %v1348_v1 }
  0x1d   :  { %1251 = vset.pattern.permute.xlu1 %v1347_v0  ;;  %45 = vperm.xlu2 %1252, %v13_v10  }
  0x1e   :  { %252 = vperm.xlu1 %1251, %v21_v9  }
  0x22   :  { %1261 = vset.pattern.permute.xlu0 %v1348_v1 }
  0x23   :  { %75 = vperm.xlu0 %1261, %v19_v2  }
  0x25   :  { %90 = vperm.xlu2 %1252, %v22_v5  }
  0x26   :  { %220 = vperm.xlu1 %1251, %v13_v10   ;;  %v31_v10 = vld [vmem:[%s1824_s1 + $0x10] sm:$0xff] }
  0x2b   :  { %85 = vperm.xlu0 %1261, %v21_v9  }
  0x2d   :  { %1254 = vset.pattern.permute.xlu2 %v1347_v0 }
  0x2e   :  { %1253 = vset.pattern.permute.xlu1 %v1348_v1  ;;  %224 = vperm.xlu2 %1254, %v14_v11  }
  0x2f   :  { %50 = vperm.xlu1 %1253, %v14_v11   ;;  %v32_v11 = vld [vmem:[%s1824_s1 + $0x18] sm:$0xff] }
  0x33   :  { %55 = vperm.xlu0 %1261, %v15_v12  }
  0x36   :  { %260 = vperm.xlu2 %1254, %v23_v13  }
  0x37   :  { %95 = vperm.xlu1 %1253, %v23_v13  }
  0x3e   :  { %1256 = vset.pattern.permute.xlu2 %v1348_v1 }
  0x3f   :  { %1255 = vset.pattern.permute.xlu1 %v1347_v0  ;;  %100 = vperm.xlu2 %1256, %v24_v14  }
  0x40   :  { %228 = vperm.xlu1 %1255, %v15_v12   ;;  %v1265_v12 = vpack.i.bf16 %v31_v10, %v32_v11 }
  0x47   :  { %1257 = vset.pattern.permute.xlu2 %v1347_v0 }
  0x48   :  { %1258 = vset.pattern.permute.xlu1 %v1348_v1  ;;  %264 = vperm.xlu2 %1257, %v24_v14  }
  0x49   :  { %60 = vperm.xlu1 %1258, %v16_v6  }
  0x50   :  { %1259 = vset.pattern.permute.xlu2 %v1348_v1 }
  0x51   :  { %65 = vperm.xlu1 %1258, %v17_v8   ;;  %105 = vperm.xlu2 %1259, %v25_v15  }
  0x59   :  { %1263 = vset.pattern.permute.xlu1 %v1347_v0  ;;  %1260 = vset.pattern.permute.xlu2 %v1347_v0 }
  0x5a   :  { %272 = vperm.xlu1 %1263, %v26_v16   ;;  %268 = vperm.xlu2 %1260, %v25_v15   ;;  %v29_v15 = vld [vmem:[%s1824_s1] sm:$0xff] }
  0x5d   :  { %v81_v17 = vpop.permute.xlu2 %80 }
  0x5e   :  { %v123_v49 = vmul.f32 %v1431_v20, %v81_v17 }
  0x62   :  { %1262 = vset.pattern.permute.xlu2 %v1348_v1 }
  0x63   :  { %110 = vperm.xlu2 %1262, %v26_v16   ;;  %v30_v16 = vld [vmem:[%s1824_s1 + $0x8] sm:$0xff] }
  0x64   :  { %v1505_v17 = vpack.i.bf16 %v29_v15, %v30_v16 }
  0x66   :  { %v249_v21 = vpop.permute.xlu2 %248 }
  0x67   :  { %v285_v26 = vmul.f32 %v1429_v19, %v249_v21 }
  0x6b   :  { %1264 = vset.pattern.permute.xlu2 %v1347_v0 }
  0x6e   :  { %v217_v27 = vpop.permute.xlu2 %216 }
  0x6f   :  { %v277_v55 = vmul.f32 %v1429_v19, %v217_v27 }
  0x74   :  { %v245_v22 = vpop.permute.xlu0 %244 }
  0x75   :  { %v36_v23 = vpop.permute.xlu1 %35  ;;  %v284_v24 = vmul.f32 %v1429_v19, %v245_v22 }
  0x76   :  { %v114_v25 = vmul.f32 %v1431_v20, %v36_v23 }
  0x77   :  { %324 = vrot.lane.b32.xlu0 %v284_v24, %s1349_s13  ;;  %v46_v31 = vpop.permute.xlu2 %45 }
  0x78   :  { %147 = vrot.lane.b32.xlu2 %v114_v25, %s1349_s13  ;;  %v116_v59 = vmul.f32 %v1431_v20, %v46_v31  ;;  %v1523_v31 = vld [vmem:[%s1824_s1] ss:$0 sm:$0xff] }
  0x7c   :  { %v257_v28 = vpop.permute.xlu0 %256 }
  0x7d   :  { %v287_v54 = vmul.f32 %v1429_v19, %v257_v28 }
  0x7e   :  { %v213_v29 = vpop.permute.xlu1 %212 }
  0x7f   :  { %326 = vrot.lane.b32.xlu0 %v285_v26, %s1349_s13  ;;  %v91_v36 = vpop.permute.xlu2 %90  ;;  %v276_v44 = vmul.f32 %v1429_v19, %v213_v29 }
  0x80   :  { %v125_v45 = vmul.f32 %v1431_v20, %v91_v36 }
  0x84   :  { %v1439_v30 = vpop.permute.xlu0 %232 }
  0x85   :  { %v281_v21 = vmul.f32 %v1429_v19, %v1439_v30 }
  0x87   :  { %v41_v32 = vpop.permute.xlu1 %40 }
  0x88   :  { %v115_v33 = vmul.f32 %v1431_v20, %v41_v32  ;;  %v225_v42 = vpop.permute.xlu2 %224 }
  0x89   :  { %v279_v50 = vmul.f32 %v1429_v19, %v225_v42 }
  0x8a   :  { %149 = vrot.lane.b32.xlu2 %v115_v33, %s1349_s13 }
  0x8c   :  { %v1443_v34 = vpop.permute.xlu0 %236 }
  0x8d   :  { %v282_v24 = vmul.f32 %v1429_v19, %v1443_v34 }
  0x90   :  { %v253_v35 = vpop.permute.xlu1 %252  ;;  %v261_v48 = vpop.permute.xlu2 %260 }
  0x91   :  { %v286_v37 = vmul.f32 %v1429_v19, %v253_v35  ;;  %v288_v8 = vmul.f32 %v1429_v19, %v261_v48 }
  0x93   :  { %328 = vrot.lane.b32.xlu2 %v286_v37, %s1349_s13 }
  0x95   :  { %v76_v38 = vpop.permute.xlu0 %75 }
  0x96   :  { %v122_v39 = vmul.f32 %v1431_v20, %v76_v38 }
  0x98   :  { %163 = vrot.lane.b32.xlu1 %v122_v39, %s1349_s13  ;;  %v221_v41 = vpop.permute.xlu1 %220 }
  0x99   :  { %v101_v53 = vpop.permute.xlu2 %100 }
  0x9a   :  { %v127_v60 = vmul.f32 %v1431_v20, %v101_v53 }
  0x9b   :  { %240 = vperm.xlu2 %1264, %v18_v40  }
  0x9d   :  { %v86_v43 = vpop.permute.xlu0 %85 }
  0x9e   :  { %v124_v46 = vmul.f32 %v1431_v20, %v86_v43 }
  0xa0   :  { %167 = vrot.lane.b32.xlu0 %v124_v46, %s1349_s13  ;;  %308 = vrot.lane.b32.xlu1 %v276_v44, %s1349_s13 }
  0xa1   :  { %v51_v47 = vpop.permute.xlu1 %50 }
  0xa2   :  { %v265_v61 = vpop.permute.xlu2 %264  ;;  %v117_v3 = vmul.f32 %v1431_v20, %v51_v47 }
  0xa3   :  { %169 = vrot.lane.b32.xlu2 %v125_v45, %s1349_s13  ;;  %v289_v4 = vmul.f32 %v1429_v19, %v265_v61 }
  0xa5   :  { %v56_v52 = vpop.permute.xlu0 %55 }
  0xa6   :  { %v118_v56 = vmul.f32 %v1431_v20, %v56_v52 }
  0xa8   :  { %70 = vperm.xlu0 %1261, %v18_v40   ;;  %165 = vrot.lane.b32.xlu1 %v123_v49, %s1349_s13 }
  0xa9   :  { %v96_v51 = vpop.permute.xlu1 %95 }
  0xaa   :  { %v126_v58 = vmul.f32 %v1431_v20, %v96_v51 }
  0xab   :  { %314 = vrot.lane.b32.xlu2 %v279_v50, %s1349_s13  ;;  %v106_v2 = vpop.permute.xlu2 %105 }
  0xac   :  { %v128_v5 = vmul.f32 %v1431_v20, %v106_v2 }
  0xb0   :  { %330 = vrot.lane.b32.xlu0 %v287_v54, %s1349_s13  ;;  %310 = vrot.lane.b32.xlu1 %v277_v55, %s1349_s13 }
  0xb1   :  { %1280 = vset.pattern.permute.xlu0 %v1347_v0  ;;  %v278_v0 = vmul.f32 %v1429_v19, %v221_v41 }
  0xb2   :  { %v229_v57 = vpop.permute.xlu1 %228 }
  0xb3   :  { %155 = vrot.lane.b32.xlu2 %v118_v56, %s1349_s13  ;;  %v280_v63 = vmul.f32 %v1429_v19, %v229_v57 }
  0xb4   :  { %v269_v6 = vpop.permute.xlu2 %268 }
  0xb5   :  { %v290_v22 = vmul.f32 %v1429_v19, %v269_v6 }
  0xb8   :  { %151 = vrot.lane.b32.xlu1 %v116_v59, %s1349_s13  ;;  %171 = vrot.lane.b32.xlu0 %v126_v58, %s1349_s13 }
  0xbb   :  { %173 = vrot.lane.b32.xlu2 %v127_v60, %s1349_s13  ;;  %v61_v62 = vpop.permute.xlu1 %60 }
  0xbc   :  { %v119_v1 = vmul.f32 %v1431_v20, %v61_v62 }
  0xbd   :  { %v111_v13 = vpop.permute.xlu2 %110 }
  0xbe   :  { %v129_v14 = vmul.f32 %v1431_v20, %v111_v13 }
  0xc0   :  { %312 = vrot.lane.b32.xlu1 %v278_v0, %s1349_s13  ;;  %316 = vrot.lane.b32.xlu0 %v280_v63, %s1349_s13 }
  0xc3   :  { %157 = vrot.lane.b32.xlu2 %v119_v1, %s1349_s13  ;;  %v66_v7 = vpop.permute.xlu1 %65 }
  0xc4   :  { %v120_v9 = vmul.f32 %v1431_v20, %v66_v7 }
  0xc8   :  { %153 = vrot.lane.b32.xlu1 %v117_v3, %s1349_s13  ;;  %334 = vrot.lane.b32.xlu0 %v289_v4, %s1349_s13 }
  0xcb   :  { %175 = vrot.lane.b32.xlu2 %v128_v5, %s1349_s13 }
  0xcc   :  { %v273_v26 = vpop.permute.xlu1 %272 }
  0xcd   :  { %v291_v27 = vmul.f32 %v1429_v19, %v273_v26 }
  0xd0   :  { %332 = vrot.lane.b32.xlu1 %v288_v8, %s1349_s13 }
  0xd2   :  { %v148_v18 = vpop.permute.xlu2 %147 }
  0xd3   :  { %159 = vrot.lane.b32.xlu2 %v120_v9, %s1349_s13  ;;  %v195_v37 = vadd.f32 %v1523_v31, %v148_v18 }
  0xd8   :  { %1266 = vrot.lane.b32.xlu1 %v1265_v12, %s1350_s19 }
  0xdb   :  { %177 = vrot.lane.b32.xlu2 %v129_v14, %s1349_s13 }
  0xe0   :  { %1271 = vrot.lane.b32.xlu1 %v1505_v17, %s1350_s19 }
  0xe4   :  { %v150_v23 = vpop.permute.xlu2 %149 }
  0xe5   :  { %v196_v47 = vadd.f32 %v1523_v31, %v150_v23 }
  0xe8   :  { %318 = vrot.lane.b32.xlu1 %v281_v21, %s1349_s13 }
  0xe9   :  { %v325_v28 = vpop.permute.xlu0 %324 }
  0xed   :  { %v329_v25 = vpop.permute.xlu2 %328 }
  0xf0   :  { %336 = vrot.lane.b32.xlu1 %v290_v22, %s1349_s13 }
  0xf1   :  { %v327_v32 = vpop.permute.xlu0 %326 }
  0xf5   :  { %v241_v29 = vpop.permute.xlu2 %240 }
  0xf6   :  { %v283_v30 = vmul.f32 %v1429_v19, %v241_v29 }
  0xf8   :  { %320 = vrot.lane.b32.xlu1 %v282_v24, %s1349_s13 }
  0xfd   :  { %v170_v48 = vpop.permute.xlu2 %169 }
  0xfe   :  { %v206_v58 = vadd.f32 %v1523_v31, %v170_v48 }
 0x100   :  { %338 = vrot.lane.b32.xlu1 %v291_v27, %s1349_s13 }
 0x105   :  { %v315_v55 = vpop.permute.xlu2 %314 }
 0x108   :  { %322 = vrot.lane.b32.xlu1 %v283_v30, %s1349_s13 }
 0x10a   :  { %v164_v33 = vpop.permute.xlu1 %163 }
 0x10b   :  { %v203_v34 = vadd.f32 %v1523_v31, %v164_v33 }
 0x10d   :  { %v364_v35 = vadd.f32 %v325_v28, %v203_v34  ;;  %v156_v0 = vpop.permute.xlu2 %155 }
 0x10e   :  { %v199_v3 = vadd.f32 %v1523_v31, %v156_v0 }
 0x10f   :  { %v380_v36 = vmax.f32 %v364_v35, 0.0 }
 0x111   :  { %420 = vrot.lane.b32.xlu0 %v380_v36, %s1351_s26 }
 0x112   :  { %v168_v38 = vpop.permute.xlu0 %167  ;;  %v309_v19 = vpop.permute.xlu1 %308 }
 0x113   :  { %v356_v39 = vadd.f32 %v309_v19, %v195_v37  ;;  %v205_v52 = vadd.f32 %v1523_v31, %v168_v38 }
 0x115   :  { %v372_v40 = vmax.f32 %v356_v39, 0.0  ;;  %v366_v54 = vadd.f32 %v329_v25, %v205_v52  ;;  %v174_v8 = vpop.permute.xlu2 %173 }
 0x116   :  { %v208_v12 = vadd.f32 %v1523_v31, %v174_v8 }
 0x117   :  { %v382_v57 = vmax.f32 %v366_v54, 0.0 }
 0x119   :  { %404 = vrot.lane.b32.xlu0 %v372_v40, %s1351_s26 }
 0x11a   :  { %v71_v41 = vpop.permute.xlu0 %70  ;;  %v166_v42 = vpop.permute.xlu1 %165 }
 0x11b   :  { %v121_v43 = vmul.f32 %v1431_v20, %v71_v41  ;;  %v204_v44 = vadd.f32 %v1523_v31, %v166_v42 }
 0x11d   :  { %v365_v45 = vadd.f32 %v327_v32, %v204_v44  ;;  %161 = vrot.lane.b32.xlu2 %v121_v43, %s1349_s13  ;;  %v158_v25 = vpop.permute.xlu2 %157 }
 0x11e   :  { %v200_v29 = vadd.f32 %v1523_v31, %v158_v25 }
 0x11f   :  { %v381_v46 = vmax.f32 %v365_v45, 0.0 }
 0x121   :  { %422 = vrot.lane.b32.xlu0 %v381_v46, %s1351_s26 }
 0x122   :  { %v331_v49 = vpop.permute.xlu0 %330  ;;  %v311_v50 = vpop.permute.xlu1 %310 }
 0x123   :  { %v357_v51 = vadd.f32 %v311_v50, %v196_v47  ;;  %v367_v61 = vadd.f32 %v331_v49, %v206_v58 }
 0x125   :  { %v373_v53 = vmax.f32 %v357_v51, 0.0  ;;  %v383_v2 = vmax.f32 %v367_v61, 0.0  ;;  %v176_v33 = vpop.permute.xlu2 %175 }
 0x126   :  { %v209_v35 = vadd.f32 %v1523_v31, %v176_v33 }
 0x129   :  { %406 = vrot.lane.b32.xlu0 %v373_v53, %s1351_s26 }
 0x12a   :  { %v152_v20 = vpop.permute.xlu1 %151  ;;  %v172_v56 = vpop.permute.xlu0 %171 }
 0x12b   :  { %v197_v59 = vadd.f32 %v1523_v31, %v152_v20  ;;  %v207_v13 = vadd.f32 %v1523_v31, %v172_v56 }
 0x12d   :  { %v160_v38 = vpop.permute.xlu2 %159 }
 0x12e   :  { %v201_v39 = vadd.f32 %v1523_v31, %v160_v38 }
 0x131   :  { %424 = vrot.lane.b32.xlu0 %v382_v57, %s1351_s26 }
 0x132   :  { %v313_v60 = vpop.permute.xlu1 %312  ;;  %v317_v1 = vpop.permute.xlu0 %316 }
 0x133   :  { %v358_v62 = vadd.f32 %v313_v60, %v197_v59  ;;  %v360_v5 = vadd.f32 %v317_v1, %v199_v3 }
 0x135   :  { %v374_v63 = vmax.f32 %v358_v62, 0.0  ;;  %v376_v9 = vmax.f32 %v360_v5, 0.0  ;;  %v178_v43 = vpop.permute.xlu2 %177 }
 0x136   :  { %v210_v44 = vadd.f32 %v1523_v31, %v178_v43 }
 0x137   :  { %408 = vrot.lane.b32.xlu2 %v374_v63, %s1351_s26 }
 0x139   :  { %426 = vrot.lane.b32.xlu0 %v383_v2, %s1351_s26 }
 0x13a   :  { %v154_v4 = vpop.permute.xlu1 %153  ;;  %v335_v11 = vpop.permute.xlu0 %334 }
 0x13b   :  { %v198_v6 = vadd.f32 %v1523_v31, %v154_v4  ;;  %v369_v15 = vadd.f32 %v335_v11, %v208_v12 }
 0x13d   :  { %v359_v7 = vadd.f32 %v315_v55, %v198_v6  ;;  %v385_v21 = vmax.f32 %v369_v15, 0.0 }
 0x13f   :  { %v375_v10 = vmax.f32 %v359_v7, 0.0 }
 0x141   :  { %412 = vrot.lane.b32.xlu0 %v376_v9, %s1351_s26  ;;  %410 = vrot.lane.b32.xlu1 %v375_v10, %s1351_s26 }
 0x142   :  { %v333_v14 = vpop.permute.xlu1 %332 }
 0x143   :  { %v368_v16 = vadd.f32 %v333_v14, %v207_v13 }
 0x145   :  { %v384_v18 = vmax.f32 %v368_v16, 0.0 }
 0x147   :  { %428 = vrot.lane.b32.xlu2 %v384_v18, %s1351_s26 }
 0x149   :  { %430 = vrot.lane.b32.xlu1 %v385_v21, %s1351_s26 }
 0x14a   :  { %v1267_v22 = vpop.permute.xlu1 %1266 }
 0x14b   :  { %v1268_v23 = vunpack.i.l.bf16 %v1267_v22  ;;  %v1269_v24 = vunpack.i.h.bf16 %v1267_v22 }
 0x14d   :  { %501 = vmatpush.msra.mxu0 %v1268_v23  ;;  %1230 = vmatpush.msra.mxu2 %v1268_v23 }
 0x14f   :  { %502 = vmatpush.msra.mxu0 %v1269_v24  ;;  %1231 = vmatpush.msra.mxu2 %v1269_v24 }
 0x152   :  { %v1272_v26 = vpop.permute.xlu1 %1271 }
 0x153   :  { %v1273_v27 = vunpack.i.l.bf16 %v1272_v26  ;;  %v1274_v28 = vunpack.i.h.bf16 %v1272_v26 }
 0x155   :  { %503 = vmatpush.msra.mxu0 %v1273_v27  ;;  %1232 = vmatpush.msra.mxu2 %v1273_v27 }
 0x157   :  { %504 = vmatpush.msra.mxu0 %v1274_v28  ;;  %1233 = vmatpush.msra.mxu2 %v1274_v28 }
 0x15a   :  { %v319_v30 = vpop.permute.xlu1 %318 }
 0x15b   :  { %v361_v32 = vadd.f32 %v319_v30, %v200_v29 }
 0x15d   :  { %v377_v34 = vmax.f32 %v361_v32, 0.0 }
 0x15f   :  { %414 = vrot.lane.b32.xlu2 %v377_v34, %s1351_s26 }
 0x162   :  { %v337_v36 = vpop.permute.xlu1 %336 }
 0x163   :  { %v370_v37 = vadd.f32 %v337_v36, %v209_v35 }
 0x165   :  { %v386_v19 = vmax.f32 %v370_v37, 0.0 }
 0x167   :  { %432 = vrot.lane.b32.xlu0 %v386_v19, %s1351_s26 }
 0x16a   :  { %v321_v40 = vpop.permute.xlu1 %320 }
 0x16b   :  { %v362_v41 = vadd.f32 %v321_v40, %v201_v39 }
 0x16d   :  { %v378_v42 = vmax.f32 %v362_v41, 0.0 }
 0x16f   :  { %416 = vrot.lane.b32.xlu1 %v378_v42, %s1351_s26 }
 0x172   :  { %v339_v45 = vpop.permute.xlu1 %338 }
 0x173   :  { %v371_v46 = vadd.f32 %v339_v45, %v210_v44 }
 0x175   :  { %v387_v47 = vmax.f32 %v371_v46, 0.0 }
 0x177   :  { %v162_v48 = vpop.permute.xlu2 %161  ;;  %434 = vrot.lane.b32.xlu2 %v387_v47, %s1351_s26  ;;  %453 = vrot.lane.b32.xlu1 %v1523_v31, %s1352_s27 }
 0x178   :  { %v202_v49 = vadd.f32 %v1523_v31, %v162_v48 }
 0x17a   :  { %v323_v50 = vpop.permute.xlu1 %322 }
 0x17b   :  { %v363_v51 = vadd.f32 %v323_v50, %v202_v49 }
 0x17d   :  { %v379_v52 = vmax.f32 %v363_v51, 0.0 }
 0x17f   :  { %418 = vrot.lane.b32.xlu0 %v379_v52, %s1351_s26  ;;  %1276 = vrot.lane.b32.xlu2 %v1505_v17, %s1349_s13 }
 0x180   :  { %709 = vrot.lane.b32.xlu1 %v1523_v31, %s1354_s29 }
 0x183   :  { %v421_v53 = vpop.permute.xlu0 %420 }
 0x184   :  { %1190 = vmatmul.msk.f32.vlgmr.msra.gmra.mxu2 %vm456_vm0, %v421_v53 }
 0x187   :  { %576 = vrot.lane.b32.xlu0 %v1523_v31, %s1353_s28 }
 0x18b   :  { %v405_v20 = vpop.permute.xlu0 %404 }
 0x18c   :  { %1182 = vmatmul.msk.f32.vlgmr.msra.gmra.mxu0 %vm456_vm0, %v405_v20 }
 0x191   :  { %v409_v56 = vpop.permute.xlu2 %408 }
 0x193   :  { %v423_v54 = vpop.permute.xlu0 %422 }
 0x194   :  { %1191 = vmatmul.msk.f32.gmra.mxu2 %vm456_vm0, %v423_v54 }
 0x19b   :  { %v407_v55 = vpop.permute.xlu0 %406 }
 0x19c   :  { %1183 = vmatmul.msk.f32.gmra.mxu0 %vm456_vm0, %v407_v55 }
 0x1a1   :  { %v429_v17 = vpop.permute.xlu2 %428 }
 0x1a3   :  { %v425_v57 = vpop.permute.xlu0 %424 }
 0x1a4   :  { %1184 = vmatmul.msk.f32.gmra.mxu0 %vm456_vm0, %v409_v56  ;;  %1192 = vmatmul.msk.f32.gmra.mxu2 %vm456_vm0, %v425_v57 }
 0x1ab   :  { %v427_v58 = vpop.permute.xlu0 %426 }
 0x1ac   :  { %1193 = vmatmul.msk.f32.gmra.mxu2 %vm456_vm0, %v427_v58 }
 0x1b3   :  { %v411_v59 = vpop.permute.xlu1 %410  ;;  %v413_v60 = vpop.permute.xlu0 %412 }
 0x1b4   :  { %1185 = vmatmul.msk.f32.gmra.mxu0 %vm456_vm0, %v411_v59  ;;  %1194 = vmatmul.msk.f32.gmra.mxu2 %vm456_vm0, %v429_v17 }
 0x1b9   :  { %v415_v62 = vpop.permute.xlu2 %414 }
 0x1bb   :  { %v431_v61 = vpop.permute.xlu1 %430 }
 0x1bc   :  { %1186 = vmatmul.msk.f32.gmra.mxu0 %vm456_vm0, %v413_v60  ;;  %1195 = vmatmul.msk.f32.gmra.mxu2 %vm456_vm0, %v431_v61 }
 0x1c4   :  { %1187 = vmatmul.msk.f32.gmra.mxu0 %vm456_vm0, %v415_v62 }
 0x1d1   :  { %v435_v0 = vpop.permute.xlu2 %434 }
 0x1d9   :  { %v433_v63 = vpop.permute.xlu0 %432  ;;  %v1277_v2 = vpop.permute.xlu2 %1276 }
 0x1da   :  { %1196 = vmatmul.msk.f32.gmra.mxu2 %vm456_vm0, %v433_v63  ;;  %v1278_v3 = vunpack.i.l.bf16 %v1277_v2  ;;  %v1279_v4 = vunpack.i.h.bf16 %v1277_v2 }
 0x1dc   :  { %642 = vmatpush.msra.mxu1 %v1278_v3  ;;  %1234 = vmatpush.msra.mxu3 %v1278_v3 }
 0x1de   :  { %643 = vmatpush.msra.mxu1 %v1279_v4  ;;  %1235 = vmatpush.msra.mxu3 %v1279_v4 }
 0x1e1   :  { %v417_v1 = vpop.permute.xlu1 %416 }
 0x1e2   :  { %1188 = vmatmul.msk.f32.gmra.mxu0 %vm456_vm0, %v417_v1  ;;  %1197 = vmatmul.msk.f32.gmra.mxu2 %vm456_vm0, %v435_v0 }
 0x1e9   :  { %v1580_v6 = vpop.permute.xlu1 %453 }
 0x1f1   :  { %v419_v5 = vpop.permute.xlu0 %418 }
 0x1f2   :  { %1189 = vmatmul.msk.f32.gmra.mxu0 %vm456_vm0, %v419_v5  ;;  %v1617_v59 = vpop.permute.xlu1 %709 }
 0x1f9   :  { %v1614_v57 = vpop.permute.xlu0 %576 }
 0x207   :  { %v530_v10 = vpop.f32.mrf.mxu2 }
 0x208   :  { %v531_v55 = vadd.f32 %v530_v10, %v1580_v6 }
 0x209   :  { %v506_v7 = vpop.f32.mrf.mxu0 }
 0x20a   :  { %v507_v8 = vadd.f32 %v506_v7, %v1580_v6  ;;  %v562_v56 = vmax.f32 %v531_v55, 0.0 }
 0x20c   :  { %v554_v9 = vmax.f32 %v507_v8, 0.0 }
 0x20e   :  { %1198 = vmatmul.msk.f32.vlgmr.msra.gmra.mxu1 %vm579_vm1, %v554_v9 }
 0x217   :  { %v533_v11 = vpop.f32.mrf.mxu2 }
 0x218   :  { %v534_v12 = vadd.f32 %v533_v11, %v1580_v6 }
 0x219   :  { %v509_v13 = vpop.f32.mrf.mxu0 }
 0x21a   :  { %v563_v14 = vmax.f32 %v534_v12, 0.0  ;;  %v510_v15 = vadd.f32 %v509_v13, %v1580_v6 }
 0x21c   :  { %v555_v16 = vmax.f32 %v510_v15, 0.0  ;;  %1207 = vmatmul.msk.f32.vlgmr.msra.gmra.mxu3 %vm579_vm1, %v563_v14 }
 0x21e   :  { %1199 = vmatmul.msk.f32.gmra.mxu1 %vm579_vm1, %v555_v16 }
 0x221   :  { %v512_v18 = vpop.f32.mrf.mxu0 }
 0x222   :  { %v513_v21 = vadd.f32 %v512_v18, %v1580_v6 }
 0x224   :  { %v556_v22 = vmax.f32 %v513_v21, 0.0 }
 0x226   :  { %1200 = vmatmul.msk.f32.gmra.mxu1 %vm579_vm1, %v556_v22 }
 0x227   :  { %v536_v23 = vpop.f32.mrf.mxu2 }
 0x228   :  { %v537_v24 = vadd.f32 %v536_v23, %v1580_v6 }
 0x22a   :  { %v564_v25 = vmax.f32 %v537_v24, 0.0 }
 0x22c   :  { %1208 = vmatmul.msk.f32.gmra.mxu3 %vm579_vm1, %v564_v25 }
 0x22f   :  { %v539_v26 = vpop.f32.mrf.mxu2 }
 0x230   :  { %v540_v27 = vadd.f32 %v539_v26, %v1580_v6 }
 0x231   :  { %v515_v28 = vpop.f32.mrf.mxu0 }
 0x232   :  { %v565_v29 = vmax.f32 %v540_v27, 0.0  ;;  %v516_v30 = vadd.f32 %v515_v28, %v1580_v6 }
 0x234   :  { %v557_v32 = vmax.f32 %v516_v30, 0.0  ;;  %1209 = vmatmul.msk.f32.gmra.mxu3 %vm579_vm1, %v565_v29 }
 0x236   :  { %1201 = vmatmul.msk.f32.gmra.mxu1 %vm579_vm1, %v557_v32 }
 0x237   :  { %v542_v33 = vpop.f32.mrf.mxu2 }
 0x238   :  { %v543_v34 = vadd.f32 %v542_v33, %v1580_v6 }
 0x239   :  { %v518_v35 = vpop.f32.mrf.mxu0 }
 0x23a   :  { %v566_v36 = vmax.f32 %v543_v34, 0.0  ;;  %v519_v37 = vadd.f32 %v518_v35, %v1580_v6 }
 0x23c   :  { %v558_v38 = vmax.f32 %v519_v37, 0.0  ;;  %1210 = vmatmul.msk.f32.gmra.mxu3 %vm579_vm1, %v566_v36 }
 0x23e   :  { %1202 = vmatmul.msk.f32.gmra.mxu1 %vm579_vm1, %v558_v38 }
 0x23f   :  { %v545_v19 = vpop.f32.mrf.mxu2 }
 0x240   :  { %v546_v39 = vadd.f32 %v545_v19, %v1580_v6 }
 0x241   :  { %v521_v40 = vpop.f32.mrf.mxu0 }
 0x242   :  { %v567_v41 = vmax.f32 %v546_v39, 0.0  ;;  %v522_v42 = vadd.f32 %v521_v40, %v1580_v6 }
 0x244   :  { %v559_v43 = vmax.f32 %v522_v42, 0.0  ;;  %1211 = vmatmul.msk.f32.gmra.mxu3 %vm579_vm1, %v567_v41 }
 0x246   :  { %1203 = vmatmul.msk.f32.gmra.mxu1 %vm579_vm1, %v559_v43 }
 0x25d   :  { %v548_v44 = vpop.f32.mrf.mxu2 }
 0x25e   :  { %v549_v45 = vadd.f32 %v548_v44, %v1580_v6 }
 0x25f   :  { %v524_v46 = vpop.f32.mrf.mxu0 }
 0x260   :  { %v568_v47 = vmax.f32 %v549_v45, 0.0  ;;  %v525_v48 = vadd.f32 %v524_v46, %v1580_v6 }
 0x262   :  { %v560_v49 = vmax.f32 %v525_v48, 0.0  ;;  %1212 = vmatmul.msk.f32.gmra.mxu3 %vm579_vm1, %v568_v47 }
 0x264   :  { %1204 = vmatmul.msk.f32.gmra.mxu1 %vm579_vm1, %v560_v49 }
 0x265   :  { %v551_v50 = vpop.f32.mrf.mxu2 }
 0x266   :  { %v552_v51 = vadd.f32 %v551_v50, %v1580_v6 }
 0x268   :  { %v569_v52 = vmax.f32 %v552_v51, 0.0 }
 0x26a   :  { %1213 = vmatmul.msk.f32.gmra.mxu3 %vm579_vm1, %v569_v52 }
 0x26f   :  { %v527_v53 = vpop.f32.mrf.mxu0 }
 0x270   :  { %v528_v20 = vadd.f32 %v527_v53, %v1580_v6 }
 0x272   :  { %v561_v54 = vmax.f32 %v528_v20, 0.0 }
 0x274   :  { %1205 = vmatmul.msk.f32.gmra.mxu1 %vm579_vm1, %v561_v54 }
 0x27c   :  { %1206 = vmatmul.msk.f32.gmra.mxu1 %vm579_vm1, %v562_v56 }
 0x28b   :  { %v645_v58 = vpop.f32.mrf.mxu1 }
 0x28c   :  { %v646_v17 = vadd.f32 %v645_v58, %v1614_v57 }
 0x28e   :  { %v693_v60 = vmax.f32 %v646_v17, 0.0 }
 0x290   :  { %v712_v61 = vmul.f32 %v1617_v59, %v693_v60 }
 0x292   :  { %v729_v62 = vsel %vm728_vm2, %v712_v61, 0.0 }
 0x293   :  { %730 = vadd.xlane.f32.xlu2 %v729_v62 }
 0x29b   :  { %v648_v63 = vpop.f32.mrf.mxu1 }
 0x29c   :  { %v649_v0 = vadd.f32 %v648_v63, %v1614_v57 }
 0x29e   :  { %v694_v1 = vmax.f32 %v649_v0, 0.0 }
 0x29f   :  { %v672_v4 = vpop.f32.mrf.mxu3 }
 0x2a0   :  { %v713_v2 = vmul.f32 %v1617_v59, %v694_v1  ;;  %v673_v7 = vadd.f32 %v672_v4, %v1614_v57 }
 0x2a2   :  { %v732_v3 = vsel %vm728_vm2, %v713_v2, 0.0  ;;  %v702_v10 = vmax.f32 %v673_v7, 0.0 }
 0x2a3   :  { %v651_v5 = vpop.f32.mrf.mxu1  ;;  %733 = vadd.xlane.f32.xlu0 %v732_v3 }
 0x2a4   :  { %v652_v6 = vadd.f32 %v651_v5, %v1614_v57  ;;  %v721_v12 = vmul.f32 %v1617_v59, %v702_v10 }
 0x2a6   :  { %v695_v8 = vmax.f32 %v652_v6, 0.0  ;;  %v756_v14 = vsel %vm728_vm2, %v721_v12, 0.0 }
 0x2a8   :  { %v714_v9 = vmul.f32 %v1617_v59, %v695_v8 }
 0x2aa   :  { %v735_v11 = vsel %vm728_vm2, %v714_v9, 0.0 }
 0x2ab   :  { %736 = vadd.xlane.f32.xlu1 %v735_v11 }
 0x2af   :  { %v675_v13 = vpop.f32.mrf.mxu3 }
 0x2b0   :  { %v676_v18 = vadd.f32 %v675_v13, %v1614_v57 }
 0x2b2   :  { %v703_v25 = vmax.f32 %v676_v18, 0.0 }
 0x2b3   :  { %v654_v15 = vpop.f32.mrf.mxu1  ;;  %757 = vadd.xlane.f32.xlu1 %v756_v14 }
 0x2b4   :  { %v655_v16 = vadd.f32 %v654_v15, %v1614_v57  ;;  %v722_v33 = vmul.f32 %v1617_v59, %v703_v25 }
 0x2b6   :  { %v696_v21 = vmax.f32 %v655_v16, 0.0  ;;  %v759_v38 = vsel %vm728_vm2, %v722_v33, 0.0 }
 0x2b7   :  { %v678_v22 = vpop.f32.mrf.mxu3 }
 0x2b8   :  { %v679_v23 = vadd.f32 %v678_v22, %v1614_v57  ;;  %v715_v24 = vmul.f32 %v1617_v59, %v696_v21 }
 0x2ba   :  { %v704_v26 = vmax.f32 %v679_v23, 0.0  ;;  %v738_v27 = vsel %vm728_vm2, %v715_v24, 0.0 }
 0x2bb   :  { %v657_v28 = vpop.f32.mrf.mxu1  ;;  %739 = vadd.xlane.f32.xlu2 %v738_v27 }
 0x2bc   :  { %v723_v29 = vmul.f32 %v1617_v59, %v704_v26  ;;  %v658_v30 = vadd.f32 %v657_v28, %v1614_v57 }
 0x2be   :  { %v762_v32 = vsel %vm728_vm2, %v723_v29, 0.0  ;;  %v697_v36 = vmax.f32 %v658_v30, 0.0 }
 0x2bf   :  { %v681_v34 = vpop.f32.mrf.mxu3  ;;  %763 = vadd.xlane.f32.xlu0 %v762_v32 }
 0x2c0   :  { %v682_v35 = vadd.f32 %v681_v34, %v1614_v57  ;;  %v716_v43 = vmul.f32 %v1617_v59, %v697_v36 }
 0x2c2   :  { %v705_v37 = vmax.f32 %v682_v35, 0.0  ;;  %v741_v49 = vsel %vm728_vm2, %v716_v43, 0.0 }
 0x2c3   :  { %v660_v19 = vpop.f32.mrf.mxu1  ;;  %760 = vadd.xlane.f32.xlu2 %v759_v38 }
 0x2c4   :  { %v661_v39 = vadd.f32 %v660_v19, %v1614_v57  ;;  %v724_v40 = vmul.f32 %v1617_v59, %v705_v37 }
 0x2c6   :  { %v698_v41 = vmax.f32 %v661_v39, 0.0  ;;  %v765_v42 = vsel %vm728_vm2, %v724_v40, 0.0 }
 0x2c7   :  { %v684_v44 = vpop.f32.mrf.mxu3  ;;  %766 = vadd.xlane.f32.xlu1 %v765_v42 }
 0x2c8   :  { %v685_v45 = vadd.f32 %v684_v44, %v1614_v57  ;;  %v717_v46 = vmul.f32 %v1617_v59, %v698_v41 }
 0x2ca   :  { %v706_v47 = vmax.f32 %v685_v45, 0.0  ;;  %v744_v48 = vsel %vm728_vm2, %v717_v46, 0.0 }
 0x2cb   :  { %745 = vadd.xlane.f32.xlu0 %v744_v48  ;;  %742 = vadd.xlane.f32.xlu2 %v741_v49 }
 0x2cc   :  { %v725_v50 = vmul.f32 %v1617_v59, %v706_v47 }
 0x2ce   :  { %v768_v51 = vsel %vm728_vm2, %v725_v50, 0.0 }
 0x2d3   :  { %769 = vadd.xlane.f32.xlu2 %v768_v51 }
 0x2e1   :  { %v663_v52 = vpop.f32.mrf.mxu1 }
 0x2e2   :  { %v664_v53 = vadd.f32 %v663_v52, %v1614_v57 }
 0x2e4   :  { %v699_v20 = vmax.f32 %v664_v53, 0.0 }
 0x2e5   :  { %v687_v54 = vpop.f32.mrf.mxu3 }
 0x2e6   :  { %v688_v55 = vadd.f32 %v687_v54, %v1614_v57  ;;  %v718_v56 = vmul.f32 %v1617_v59, %v699_v20 }
 0x2e8   :  { %v707_v58 = vmax.f32 %v688_v55, 0.0  ;;  %v747_v17 = vsel %vm728_vm2, %v718_v56, 0.0 }
 0x2e9   :  { %748 = vadd.xlane.f32.xlu1 %v747_v17 }
 0x2ea   :  { %v726_v60 = vmul.f32 %v1617_v59, %v707_v58 }
 0x2ec   :  { %v771_v61 = vsel %vm728_vm2, %v726_v60, 0.0 }
 0x2ed   :  { %v690_v62 = vpop.f32.mrf.mxu3  ;;  %772 = vadd.xlane.f32.xlu0 %v771_v61 }
 0x2ee   :  { %v691_v63 = vadd.f32 %v690_v62, %v1614_v57 }
 0x2f0   :  { %v708_v0 = vmax.f32 %v691_v63, 0.0 }
 0x2f1   :  { %v666_v1 = vpop.f32.mrf.mxu1 }
 0x2f2   :  { %v667_v2 = vadd.f32 %v666_v1, %v1614_v57  ;;  %v727_v3 = vmul.f32 %v1617_v59, %v708_v0 }
 0x2f4   :  { %v700_v4 = vmax.f32 %v667_v2, 0.0  ;;  %v774_v5 = vsel %vm728_vm2, %v727_v3, 0.0 }
 0x2f5   :  { %775 = vadd.xlane.f32.xlu1 %v774_v5 }
 0x2f6   :  { %v719_v6 = vmul.f32 %v1617_v59, %v700_v4 }
 0x2f8   :  { %v750_v7 = vsel %vm728_vm2, %v719_v6, 0.0 }
 0x2f9   :  { %v669_v8 = vpop.f32.mrf.mxu1  ;;  %751 = vadd.xlane.f32.xlu2 %v750_v7 }
 0x2fa   :  { %v670_v9 = vadd.f32 %v669_v8, %v1614_v57 }
 0x2fc   :  { %v701_v10 = vmax.f32 %v670_v9, 0.0 }
 0x2fe   :  { %v720_v11 = vmul.f32 %v1617_v59, %v701_v10 }
 0x300   :  { %v753_v12 = vsel %vm728_vm2, %v720_v11, 0.0 }
 0x301   :  { %754 = vadd.xlane.f32.xlu0 %v753_v12 }
 0x306   :  { %v731_v13 = vpop.xlane.xlu2 %730 }
 0x307   :  { %v777_v14 = vadd.f32 %v1523_v31, %v731_v13 }
 0x309   :  { %v1214_v15 = vmul.f32 -1.442695, %v777_v14 }
 0x30b   :  { %1282 = vpow2.f32 %v1214_v15 }
 0x311   :  { %v1283_v16 = vpop.eup %1282 }
 0x312   :  { %v841_v18 = vadd.f32 1.0, %v1283_v16 }
 0x314   :  { %1284 = vrcp.f32 %v841_v18  ;;  %v868_v26 = vand.u32 2147483648, %v841_v18  ;;  %v866_v29 = vand.u32 2147483647, %v841_v18  ;;  %vm862_vm4 = vweird.f32 %v841_v18 }
 0x316   :  { %v734_v21 = vpop.xlane.xlu0 %733  ;;  %v869_v35 = vor.u32 1.1754944e-38, %v868_v26  ;;  %vm867_vm6 = vcmp.eq.f32.partialorder %v866_v29, 8.507059e+37 }
 0x317   :  { %v778_v22 = vadd.f32 %v1523_v31, %v734_v21 }
 0x319   :  { %v1215_v23 = vmul.f32 -1.442695, %v778_v22 }
 0x31a   :  { %v1285_v24 = vpop.eup %1284 }
 0x31b   :  { %1286 = vpow2.f32 %v1215_v23  ;;  %v858_v57 = vmul.f32 %v1285_v24, %v841_v18  ;;  %vm863_vm3 = vweird.f32 %v1285_v24 }
 0x31c   :  { %vm864_vm5 = vmor %vm862_vm4, %vm863_vm3 }
 0x31d   :  { %v859_v25 = vsub.f32 1.0, %v858_v57 }
 0x31e   :  { %v737_v59 = vpop.xlane.xlu1 %736 }
 0x31f   :  { %v779_v27 = vadd.f32 %v1523_v31, %v737_v59  ;;  %v860_v28 = vmul.f32 %v1285_v24, %v859_v25 }
 0x321   :  { %v1287_v30 = vpop.eup %1286  ;;  %v1216_v32 = vmul.f32 -1.442695, %v779_v27  ;;  %v861_v33 = vadd.f32 %v1285_v24, %v860_v28 }
 0x322   :  { %v842_v34 = vadd.f32 1.0, %v1287_v30 }
 0x323   :  { %1288 = vpow2.f32 %v1216_v32  ;;  %v865_v36 = vsel %vm864_vm5, %v1285_v24, %v861_v33 }
 0x324   :  { %1290 = vrcp.f32 %v842_v34  ;;  %v870_v37 = vsel %vm867_vm6, %v869_v35, %v865_v36  ;;  %v881_v46 = vand.u32 2147483647, %v842_v34  ;;  %v883_v47 = vand.u32 2147483648, %v842_v34 }
 0x325   :  { %1113 = vrot.lane.b32.xlu2 %v870_v37, %s1355_s30  ;;  %vm877_vm8 = vweird.f32 %v842_v34 }
 0x326   :  { %v758_v38 = vpop.xlane.xlu1 %757  ;;  %vm882_vm10 = vcmp.eq.f32.partialorder %v881_v46, 8.507059e+37  ;;  %v884_v55 = vor.u32 1.1754944e-38, %v883_v47 }
 0x327   :  { %v786_v19 = vadd.f32 %v1523_v31, %v758_v38 }
 0x329   :  { %v1289_v39 = vpop.eup %1288  ;;  %v1223_v40 = vmul.f32 -1.442695, %v786_v19 }
 0x32a   :  { %v1291_v41 = vpop.eup %1290  ;;  %v843_v42 = vadd.f32 1.0, %v1289_v39 }
 0x32b   :  { %1292 = vpow2.f32 %v1223_v40  ;;  %v873_v43 = vmul.f32 %v1291_v41, %v842_v34  ;;  %vm878_vm7 = vweird.f32 %v1291_v41 }
 0x32c   :  { %1294 = vrcp.f32 %v843_v42  ;;  %vm879_vm9 = vmor %vm877_vm8, %vm878_vm7  ;;  %v896_v0 = vand.u32 2147483647, %v843_v42  ;;  %v898_v1 = vand.u32 2147483648, %v843_v42  ;;  %vm892_vm12 = vweird.f32 %v843_v42 }
 0x32d   :  { %v874_v44 = vsub.f32 1.0, %v873_v43 }
 0x32e   :  { %v740_v45 = vpop.xlane.xlu2 %739  ;;  %vm897_vm14 = vcmp.eq.f32.partialorder %v896_v0, 8.507059e+37  ;;  %v899_v10 = vor.u32 1.1754944e-38, %v898_v1 }
 0x32f   :  { %v780_v48 = vadd.f32 %v1523_v31, %v740_v45  ;;  %v875_v49 = vmul.f32 %v1291_v41, %v874_v44 }
 0x331   :  { %v1293_v50 = vpop.eup %1292  ;;  %v1217_v51 = vmul.f32 -1.442695, %v780_v48  ;;  %v876_v52 = vadd.f32 %v1291_v41, %v875_v49 }
 0x332   :  { %v1295_v53 = vpop.eup %1294  ;;  %v1672_v20 = vadd.f32 1.0, %v1293_v50  ;;  %v764_v54 = vpop.xlane.xlu0 %763 }
 0x333   :  { %1296 = vpow2.f32 %v1217_v51  ;;  %v788_v56 = vadd.f32 %v1523_v31, %v764_v54  ;;  %v880_v58 = vsel %vm879_vm9, %v1291_v41, %v876_v52  ;;  %v888_v17 = vmul.f32 %v1295_v53, %v843_v42 }
 0x334   :  { %1298 = vrcp.f32 %v1672_v20  ;;  %v885_v60 = vsel %vm882_vm10, %v884_v55, %v880_v58  ;;  %vm893_vm11 = vweird.f32 %v1295_v53  ;;  %v1001_v24 = vand.u32 2147483647, %v1672_v20 }
 0x335   :  { %v1225_v61 = vmul.f32 -1.442695, %v788_v56  ;;  %1115 = vrot.lane.b32.xlu0 %v885_v60, %s1355_s30  ;;  %v889_v62 = vsub.f32 1.0, %v888_v17  ;;  %vm894_vm13 = vmor %vm892_vm12, %vm893_vm11  ;;  %v1003_v57 = vand.u32 2147483648, %v1672_v20  ;;  %vm997_vm0 = vweird.f32 %v1672_v20 }
 0x336   :  { %v761_v63 = vpop.xlane.xlu2 %760  ;;  %vm1002_vm2 = vcmp.eq.f32.partialorder %v1001_v24, 8.507059e+37 }
 0x337   :  { %1300 = vpow2.f32 %v1225_v61  ;;  %v787_v2 = vadd.f32 %v1523_v31, %v761_v63  ;;  %v890_v3 = vmul.f32 %v1295_v53, %v889_v62  ;;  %v1004_v34 = vor.u32 1.1754944e-38, %v1003_v57 }
 0x339   :  { %v1297_v4 = vpop.eup %1296  ;;  %v1224_v5 = vmul.f32 -1.442695, %v787_v2  ;;  %v891_v6 = vadd.f32 %v1295_v53, %v890_v3 }
 0x33a   :  { %v1299_v7 = vpop.eup %1298  ;;  %v844_v8 = vadd.f32 1.0, %v1297_v4  ;;  %v767_v9 = vpop.xlane.xlu1 %766 }
 0x33b   :  { %1302 = vpow2.f32 %v1224_v5  ;;  %v789_v11 = vadd.f32 %v1523_v31, %v767_v9  ;;  %v895_v12 = vsel %vm894_vm13, %v1295_v53, %v891_v6  ;;  %v993_v13 = vmul.f32 %v1299_v7, %v1672_v20 }
 0x33c   :  { %1304 = vrcp.f32 %v844_v8  ;;  %v900_v14 = vsel %vm897_vm14, %v899_v10, %v895_v12  ;;  %vm998_vm15 = vweird.f32 %v1299_v7  ;;  %v911_v40 = vand.u32 2147483647, %v844_v8 }
 0x33d   :  { %v1301_v15 = vpop.eup %1300  ;;  %v1226_v16 = vmul.f32 -1.442695, %v789_v11  ;;  %1117 = vrot.lane.b32.xlu1 %v900_v14, %s1355_s30  ;;  %v994_v18 = vsub.f32 1.0, %v993_v13  ;;  %vm999_vm1 = vmor %vm997_vm0, %vm998_vm15  ;;  %v913_v41 = vand.u32 2147483648, %v844_v8  ;;  %vm907_vm4 = vweird.f32 %v844_v8 }
 0x33e   :  { %v1681_v21 = vadd.f32 1.0, %v1301_v15  ;;  %v746_v22 = vpop.xlane.xlu0 %745  ;;  %v743_v23 = vpop.xlane.xlu2 %742  ;;  %vm912_vm6 = vcmp.eq.f32.partialorder %v911_v40, 8.507059e+37 }
 0x33f   :  { %1306 = vpow2.f32 %v1226_v16  ;;  %v782_v25 = vadd.f32 %v1523_v31, %v746_v22  ;;  %v781_v59 = vadd.f32 %v1523_v31, %v743_v23  ;;  %v995_v26 = vmul.f32 %v1299_v7, %v994_v18 }
 0x340   :  { %1308 = vrcp.f32 %v1681_v21  ;;  %v1031_v47 = vand.u32 2147483647, %v1681_v21  ;;  %v914_v50 = vor.u32 1.1754944e-38, %v913_v41  ;;  %v1033_v51 = vand.u32 2147483648, %v1681_v21 }
 0x341   :  { %v1303_v27 = vpop.eup %1302  ;;  %v1219_v28 = vmul.f32 -1.442695, %v782_v25  ;;  %v1218_v29 = vmul.f32 -1.442695, %v781_v59  ;;  %v996_v30 = vadd.f32 %v1299_v7, %v995_v26  ;;  %vm1027_vm8 = vweird.f32 %v1681_v21 }
 0x342   :  { %v1305_v32 = vpop.eup %1304  ;;  %v1689_v33 = vadd.f32 1.0, %v1303_v27  ;;  %vm1032_vm9 = vcmp.eq.f32.partialorder %v1031_v47, 8.507059e+37  ;;  %v1034_v61 = vor.u32 1.1754944e-38, %v1033_v51 }
 0x343   :  { %1310 = vpow2.f32 %v1219_v28  ;;  %v1000_v35 = vsel %vm999_vm1, %v1299_v7, %v996_v30  ;;  %v903_v36 = vmul.f32 %v1305_v32, %v844_v8  ;;  %vm908_vm3 = vweird.f32 %v1305_v32 }
 0x344   :  { %1312 = vrcp.f32 %v1689_v33  ;;  %v1005_v31 = vsel %vm1002_vm2, %v1004_v34, %v1000_v35  ;;  %vm909_vm5 = vmor %vm907_vm4, %vm908_vm3  ;;  %v1016_v62 = vand.u32 2147483647, %v1689_v33  ;;  %v1018_v63 = vand.u32 2147483648, %v1689_v33 }
 0x345   :  { %v1307_v37 = vpop.eup %1306  ;;  %1314 = vpow2.f32 %v1218_v29  ;;  %1131 = vrot.lane.b32.xlu0 %v1005_v31, %s1355_s30  ;;  %v904_v38 = vsub.f32 1.0, %v903_v36  ;;  %vm1012_vm12 = vweird.f32 %v1689_v33 }
 0x346   :  { %v1309_v19 = vpop.eup %1308  ;;  %v1694_v39 = vadd.f32 1.0, %v1307_v37  ;;  %vm1017_vm14 = vcmp.eq.f32.partialorder %v1016_v62, 8.507059e+37  ;;  %v1019_v7 = vor.u32 1.1754944e-38, %v1018_v63  ;;  %v770_v34 = vpop.xlane.xlu2 %769  ;;  %v1346_v37 = vld [vmem:[%s1824_s1] ss:$0 sm:$0xff] }
 0x347   :  { %v905_v42 = vmul.f32 %v1305_v32, %v904_v38  ;;  %v1023_v43 = vmul.f32 %v1309_v19, %v1681_v21  ;;  %vm1028_vm7 = vweird.f32 %v1309_v19  ;;  %v790_v40 = vadd.f32 %v1346_v37, %v770_v34 }
 0x348   :  { %1316 = vrcp.f32 %v1694_v39  ;;  %vm1029_vm10 = vmor %vm1027_vm8, %vm1028_vm7  ;;  %v1046_v8 = vand.u32 2147483647, %v1694_v39  ;;  %v1048_v9 = vand.u32 2147483648, %v1694_v39  ;;  %vm1042_vm0 = vweird.f32 %v1694_v39 }
 0x349   :  { %v1311_v44 = vpop.eup %1310  ;;  %v906_v45 = vadd.f32 %v1305_v32, %v905_v42  ;;  %v1024_v46 = vsub.f32 1.0, %v1023_v43  ;;  %v1227_v42 = vmul.f32 -1.442695, %v790_v40 }
 0x34a   :  { %v1313_v48 = vpop.eup %1312  ;;  %v1699_v49 = vadd.f32 1.0, %v1311_v44  ;;  %vm1047_vm2 = vcmp.eq.f32.partialorder %v1046_v8, 8.507059e+37  ;;  %v1049_v21 = vor.u32 1.1754944e-38, %v1048_v9 }
 0x34b   :  { %v1315_v52 = vpop.eup %1314  ;;  %v910_v53 = vsel %vm909_vm5, %v1305_v32, %v906_v45  ;;  %v1025_v20 = vmul.f32 %v1309_v19, %v1024_v46  ;;  %v1008_v54 = vmul.f32 %v1313_v48, %v1689_v33  ;;  %vm1013_vm11 = vweird.f32 %v1313_v48 }
 0x34c   :  { %1318 = vrcp.f32 %v1699_v49  ;;  %v1704_v55 = vadd.f32 1.0, %v1315_v52  ;;  %v915_v56 = vsel %vm912_vm6, %v914_v50, %v910_v53  ;;  %vm1014_vm13 = vmor %vm1012_vm12, %vm1013_vm11  ;;  %v941_v22 = vand.u32 2147483647, %v1699_v49 }
 0x34d   :  { %1119 = vrot.lane.b32.xlu0 %v915_v56, %s1355_s30  ;;  %v1026_v58 = vadd.f32 %v1309_v19, %v1025_v20  ;;  %v1009_v17 = vsub.f32 1.0, %v1008_v54  ;;  %v943_v23 = vand.u32 2147483648, %v1699_v49  ;;  %vm937_vm4 = vweird.f32 %v1699_v49 }
 0x34e   :  { %v1317_v60 = vpop.eup %1316  ;;  %1320 = vrcp.f32 %v1704_v55  ;;  %v928_v26 = vand.u32 2147483648, %v1704_v55  ;;  %v926_v29 = vand.u32 2147483647, %v1704_v55  ;;  %vm942_vm7 = vcmp.eq.f32.partialorder %v941_v22, 8.507059e+37 }
 0x34f   :  { %v1030_v0 = vsel %vm1029_vm10, %v1309_v19, %v1026_v58  ;;  %v1010_v1 = vmul.f32 %v1313_v48, %v1009_v17  ;;  %v1038_v2 = vmul.f32 %v1317_v60, %v1694_v39  ;;  %vm1043_vm15 = vweird.f32 %v1317_v60 }
 0x350   :  { %v1035_v3 = vsel %vm1032_vm9, %v1034_v61, %v1030_v0  ;;  %vm1044_vm1 = vmor %vm1042_vm0, %vm1043_vm15  ;;  %v944_v30 = vor.u32 1.1754944e-38, %v943_v23  ;;  %vm922_vm8 = vweird.f32 %v1704_v55  ;;  %v929_v31 = vor.u32 1.1754944e-38, %v928_v26 }
 0x351   :  { %1135 = vrot.lane.b32.xlu1 %v1035_v3, %s1355_s30  ;;  %v1011_v4 = vadd.f32 %v1313_v48, %v1010_v1  ;;  %v1039_v5 = vsub.f32 1.0, %v1038_v2  ;;  %vm927_vm10 = vcmp.eq.f32.partialorder %v926_v29, 8.507059e+37  ;;  %vm1161_vm15 = vcmask 7168  }
 0x352   :  { %v1319_v6 = vpop.eup %1318 }
 0x353   :  { %v1015_v10 = vsel %vm1014_vm13, %v1313_v48, %v1011_v4  ;;  %v1040_v11 = vmul.f32 %v1317_v60, %v1039_v5  ;;  %v933_v12 = vmul.f32 %v1319_v6, %v1699_v49  ;;  %vm938_vm3 = vweird.f32 %v1319_v6 }
 0x354   :  { %v1321_v13 = vpop.eup %1320  ;;  %v1020_v14 = vsel %vm1017_vm14, %v1019_v7, %v1015_v10  ;;  %vm939_vm6 = vmor %vm937_vm4, %vm938_vm3 }
 0x355   :  { %1133 = vrot.lane.b32.xlu2 %v1020_v14, %s1355_s30  ;;  %v1041_v15 = vadd.f32 %v1317_v60, %v1040_v11  ;;  %v934_v16 = vsub.f32 1.0, %v933_v12  ;;  %v918_v18 = vmul.f32 %v1321_v13, %v1704_v55  ;;  %vm923_vm5 = vweird.f32 %v1321_v13 }
 0x356   :  { %vm924_vm9 = vmor %vm922_vm8, %vm923_vm5 }
 0x357   :  { %v1045_v24 = vsel %vm1044_vm1, %v1317_v60, %v1041_v15  ;;  %v935_v57 = vmul.f32 %v1319_v6, %v934_v16  ;;  %v919_v25 = vsub.f32 1.0, %v918_v18 }
 0x358   :  { %v1050_v59 = vsel %vm1047_vm2, %v1049_v21, %v1045_v24 }
 0x359   :  { %1137 = vrot.lane.b32.xlu0 %v1050_v59, %s1355_s30  ;;  %v936_v27 = vadd.f32 %v1319_v6, %v935_v57  ;;  %v920_v28 = vmul.f32 %v1321_v13, %v919_v25 }
 0x35b   :  { %v940_v32 = vsel %vm939_vm6, %v1319_v6, %v936_v27  ;;  %v921_v33 = vadd.f32 %v1321_v13, %v920_v28 }
 0x35c   :  { %v749_v35 = vpop.xlane.xlu1 %748  ;;  %v945_v36 = vsel %vm942_vm7, %v944_v30, %v940_v32 }
 0x35d   :  { %v783_v38 = vadd.f32 %v1346_v37, %v749_v35  ;;  %1123 = vrot.lane.b32.xlu1 %v945_v36, %s1355_s30  ;;  %v925_v19 = vsel %vm924_vm9, %v1321_v13, %v921_v33 }
 0x35e   :  { %v930_v39 = vsel %vm927_vm10, %v929_v31, %v925_v19 }
 0x35f   :  { %v1220_v41 = vmul.f32 -1.442695, %v783_v38  ;;  %1121 = vrot.lane.b32.xlu2 %v930_v39, %s1355_s30 }
 0x360   :  { %v773_v43 = vpop.xlane.xlu0 %772 }
 0x361   :  { %1322 = vpow2.f32 %v1220_v41  ;;  %v791_v46 = vadd.f32 %v1346_v37, %v773_v43 }
 0x362   :  { %1324 = vpow2.f32 %v1227_v42 }
 0x363   :  { %v1228_v50 = vmul.f32 -1.442695, %v791_v46 }
 0x367   :  { %v1323_v44 = vpop.eup %1322 }
 0x368   :  { %v847_v45 = vadd.f32 1.0, %v1323_v44  ;;  %v776_v47 = vpop.xlane.xlu1 %775  ;;  %v1325_v52 = vpop.eup %1324 }
 0x369   :  { %v792_v48 = vadd.f32 %v1346_v37, %v776_v47  ;;  %v1732_v55 = vadd.f32 1.0, %v1325_v52 }
 0x36a   :  { %1326 = vrcp.f32 %v847_v45  ;;  %v958_v62 = vand.u32 2147483648, %v847_v45  ;;  %v956_v1 = vand.u32 2147483647, %v847_v45  ;;  %vm952_vm12 = vweird.f32 %v847_v45 }
 0x36b   :  { %v1229_v49 = vmul.f32 -1.442695, %v792_v48  ;;  %vm1057_vm9 = vweird.f32 %v1732_v55  ;;  %v1063_v46 = vand.u32 2147483648, %v1732_v55 }
 0x36c   :  { %v752_v51 = vpop.xlane.xlu2 %751  ;;  %v959_v7 = vor.u32 1.1754944e-38, %v958_v62  ;;  %vm957_vm14 = vcmp.eq.f32.partialorder %v956_v1, 8.507059e+37 }
 0x36d   :  { %1328 = vpow2.f32 %v1229_v49  ;;  %v784_v53 = vadd.f32 %v1346_v37, %v752_v51  ;;  %v1061_v49 = vand.u32 2147483647, %v1732_v55 }
 0x36e   :  { %1330 = vpow2.f32 %v1228_v50 }
 0x36f   :  { %v1221_v20 = vmul.f32 -1.442695, %v784_v53 }
 0x370   :  { %v1327_v54 = vpop.eup %1326 }
 0x371   :  { %1332 = vpow2.f32 %v1221_v20  ;;  %v948_v56 = vmul.f32 %v1327_v54, %v847_v45  ;;  %vm953_vm11 = vweird.f32 %v1327_v54  ;;  %v1064_v20 = vor.u32 1.1754944e-38, %v1063_v46 }
 0x372   :  { %1334 = vrcp.f32 %v1732_v55  ;;  %vm954_vm13 = vmor %vm952_vm12, %vm953_vm11 }
 0x373   :  { %v1329_v58 = vpop.eup %1328  ;;  %v949_v17 = vsub.f32 1.0, %v948_v56 }
 0x374   :  { %v856_v60 = vadd.f32 1.0, %v1329_v58  ;;  %v755_v61 = vpop.xlane.xlu0 %754  ;;  %v1331_v2 = vpop.eup %1330 }
 0x375   :  { %v785_v63 = vadd.f32 %v1346_v37, %v755_v61  ;;  %v950_v0 = vmul.f32 %v1327_v54, %v949_v17  ;;  %v1737_v10 = vadd.f32 1.0, %v1331_v2 }
 0x376   :  { %1336 = vrcp.f32 %v856_v60  ;;  %v1091_v23 = vand.u32 2147483647, %v856_v60  ;;  %v1093_v24 = vand.u32 2147483648, %v856_v60  ;;  %vm1087_vm1 = vweird.f32 %v856_v60 }
 0x377   :  { %v1333_v3 = vpop.eup %1332  ;;  %v1222_v4 = vmul.f32 -1.442695, %v785_v63  ;;  %v951_v5 = vadd.f32 %v1327_v54, %v950_v0 }
 0x378   :  { %v848_v6 = vadd.f32 1.0, %v1333_v3  ;;  %v1735_v9 = vpop.eup %1334  ;;  %vm1092_vm3 = vcmp.eq.f32.partialorder %v1091_v23, 8.507059e+37  ;;  %v1094_v29 = vor.u32 1.1754944e-38, %v1093_v24 }
 0x379   :  { %1338 = vpow2.f32 %v1222_v4  ;;  %v955_v8 = vsel %vm954_vm13, %v1327_v54, %v951_v5  ;;  %v1053_v18 = vmul.f32 %v1735_v9, %v1732_v55  ;;  %vm1058_vm8 = vweird.f32 %v1735_v9 }
 0x37a   :  { %1340 = vrcp.f32 %v848_v6  ;;  %v960_v11 = vsel %vm957_vm14, %v959_v7, %v955_v8  ;;  %v973_v30 = vand.u32 2147483648, %v848_v6  ;;  %v971_v34 = vand.u32 2147483647, %v848_v6  ;;  %vm1059_vm11 = vmor %vm1057_vm9, %vm1058_vm8 }
 0x37b   :  { %1125 = vrot.lane.b32.xlu0 %v960_v11, %s1355_s30  ;;  %1342 = vrcp.f32 %v1737_v10  ;;  %v1054_v27 = vsub.f32 1.0, %v1053_v18  ;;  %vm967_vm5 = vweird.f32 %v848_v6  ;;  %v1078_v55 = vand.u32 2147483648, %v1737_v10 }
 0x37c   :  { %v1337_v12 = vpop.eup %1336  ;;  %v974_v19 = vor.u32 1.1754944e-38, %v973_v30  ;;  %vm972_vm7 = vcmp.eq.f32.partialorder %v971_v34, 8.507059e+37 }
 0x37d   :  { %v1083_v13 = vmul.f32 %v1337_v12, %v856_v60  ;;  %vm1088_vm0 = vweird.f32 %v1337_v12  ;;  %v1055_v31 = vmul.f32 %v1735_v9, %v1054_v27  ;;  %v1076_v60 = vand.u32 2147483647, %v1737_v10 }
 0x37e   :  { %vm1089_vm2 = vmor %vm1087_vm1, %vm1088_vm0  ;;  %vm1062_vm0 = vcmp.eq.f32.partialorder %v1061_v49, 8.507059e+37  ;;  %v1079_v62 = vor.u32 1.1754944e-38, %v1078_v55 }
 0x37f   :  { %v1339_v14 = vpop.eup %1338  ;;  %v1114_v15 = vpop.permute.xlu2 %1113  ;;  %v1084_v16 = vsub.f32 1.0, %v1083_v13  ;;  %v1056_v43 = vadd.f32 %v1735_v9, %v1055_v31 }
 0x380   :  { %v1341_v21 = vpop.eup %1340  ;;  %v849_v22 = vadd.f32 1.0, %v1339_v14  ;;  %1162 = vst.msk [vmem:[%s1825_s2] sm:$0xff] %vm1161_vm15, %v1114_v15 }
 0x381   :  { %v1085_v57 = vmul.f32 %v1337_v12, %v1084_v16  ;;  %v963_v25 = vmul.f32 %v1341_v21, %v848_v6  ;;  %v1343_v28 = vpop.eup %1342  ;;  %vm968_vm4 = vweird.f32 %v1341_v21  ;;  %v1060_v51 = vsel %vm1059_vm11, %v1735_v9, %v1056_v43 }
 0x382   :  { %1344 = vrcp.f32 %v849_v22  ;;  %v1068_v37 = vmul.f32 %v1343_v28, %v1737_v10  ;;  %vm969_vm6 = vmor %vm967_vm5, %vm968_vm4  ;;  %v988_v45 = vand.u32 2147483648, %v849_v22  ;;  %v986_v48 = vand.u32 2147483647, %v849_v22 }
 0x383   :  { %v1086_v59 = vadd.f32 %v1337_v12, %v1085_v57  ;;  %v964_v26 = vsub.f32 1.0, %v963_v25  ;;  %vm982_vm12 = vweird.f32 %v849_v22  ;;  %v1065_v58 = vsel %vm1062_vm0, %v1064_v20, %v1060_v51 }
 0x384   :  { %v1069_v44 = vsub.f32 1.0, %v1068_v37  ;;  %v989_v53 = vor.u32 1.1754944e-38, %v988_v45  ;;  %vm987_vm14 = vcmp.eq.f32.partialorder %v986_v48, 8.507059e+37  ;;  %vm1073_vm1 = vweird.f32 %v1343_v28 }
 0x385   :  { %v1090_v32 = vsel %vm1089_vm2, %v1337_v12, %v1086_v59  ;;  %v965_v33 = vmul.f32 %v1341_v21, %v964_v26  ;;  %vm1072_vm2 = vweird.f32 %v1737_v10  ;;  %vm1077_vm4 = vcmp.eq.f32.partialorder %v1076_v60, 8.507059e+37 }
 0x386   :  { %v1095_v35 = vsel %vm1092_vm3, %v1094_v29, %v1090_v32  ;;  %v1070_v52 = vmul.f32 %v1343_v28, %v1069_v44  ;;  %vm1074_vm3 = vmor %vm1072_vm2, %vm1073_vm1 }
 0x387   :  { %1143 = vrot.lane.b32.xlu0 %v1095_v35, %s1355_s30  ;;  %v966_v36 = vadd.f32 %v1341_v21, %v965_v33 }
 0x388   :  { %v1345_v38 = vpop.eup %1344  ;;  %v1071_v17 = vadd.f32 %v1343_v28, %v1070_v52 }
 0x389   :  { %v970_v39 = vsel %vm969_vm6, %v1341_v21, %v966_v36  ;;  %v978_v40 = vmul.f32 %v1345_v38, %v849_v22  ;;  %vm983_vm10 = vweird.f32 %v1345_v38 }
 0x38a   :  { %v975_v41 = vsel %vm972_vm7, %v974_v19, %v970_v39  ;;  %vm984_vm13 = vmor %vm982_vm12, %vm983_vm10  ;;  %v1075_v61 = vsel %vm1074_vm3, %v1343_v28, %v1071_v17 }
 0x38b   :  { %1127 = vrot.lane.b32.xlu2 %v975_v41, %s1355_s30  ;;  %v979_v42 = vsub.f32 1.0, %v978_v40  ;;  %v1080_v63 = vsel %vm1077_vm4, %v1079_v62, %v1075_v61 }
 0x38d   :  { %v980_v47 = vmul.f32 %v1345_v38, %v979_v42 }
 0x38f   :  { %v981_v50 = vadd.f32 %v1345_v38, %v980_v47 }
 0x391   :  { %v985_v54 = vsel %vm984_vm13, %v1345_v38, %v981_v50 }
 0x392   :  { %v990_v56 = vsel %vm987_vm14, %v989_v53, %v985_v54 }
 0x393   :  { %1129 = vrot.lane.b32.xlu1 %v990_v56, %s1355_s30  ;;  %1139 = vrot.lane.b32.xlu2 %v1065_v58, %s1355_s30 }
 0x39b   :  { %1141 = vrot.lane.b32.xlu1 %v1080_v63, %s1355_s30 }
 0x3a7   :  { %v1116_v0 = vpop.permute.xlu0 %1115 }
 0x3a8   :  { %1163 = vst.msk [vmem:[%s1825_s2 + $0x8] sm:$0xff] %vm1161_vm15, %v1116_v0 }
 0x3af   :  { %v1118_v1 = vpop.permute.xlu1 %1117  ;;  %v1134_v2 = vpop.permute.xlu2 %1133 }
 0x3b0   :  { %1164 = vst.msk [vmem:[%s1825_s2 + $0x10] sm:$0xff] %vm1161_vm15, %v1118_v1 }
 0x3b1   :  { %1172 = vst.msk [vmem:[%s1825_s2 + $0x50] sm:$0xff] %vm1161_vm15, %v1134_v2 }
 0x3b7   :  { %v1132_v3 = vpop.permute.xlu0 %1131 }
 0x3b8   :  { %1171 = vst.msk [vmem:[%s1825_s2 + $0x48] sm:$0xff] %vm1161_vm15, %v1132_v3 }
 0x3b9   :  { %v1122_v4 = vpop.permute.xlu2 %1121 }
 0x3ba   :  { %1166 = vst.msk [vmem:[%s1825_s2 + $0x20] sm:$0xff] %vm1161_vm15, %v1122_v4 }
 0x3bf   :  { %v1120_v5 = vpop.permute.xlu0 %1119 }
 0x3c0   :  { %1165 = vst.msk [vmem:[%s1825_s2 + $0x18] sm:$0xff] %vm1161_vm15, %v1120_v5 }
 0x3c3   :  { %v1136_v6 = vpop.permute.xlu1 %1135 }
 0x3c4   :  { %1173 = vst.msk [vmem:[%s1825_s2 + $0x58] sm:$0xff] %vm1161_vm15, %v1136_v6 }
 0x3cb   :  { %v1138_v7 = vpop.permute.xlu0 %1137 }
 0x3cc   :  { %1174 = vst.msk [vmem:[%s1825_s2 + $0x60] sm:$0xff] %vm1161_vm15, %v1138_v7 }
 0x3cf   :  { %v1124_v8 = vpop.permute.xlu1 %1123 }
 0x3d0   :  { %1167 = vst.msk [vmem:[%s1825_s2 + $0x28] sm:$0xff] %vm1161_vm15, %v1124_v8 }
 0x3e5   :  { %v1128_v9 = vpop.permute.xlu2 %1127 }
 0x3e6   :  { %1169 = vst.msk [vmem:[%s1825_s2 + $0x38] sm:$0xff] %vm1161_vm15, %v1128_v9 }
 0x3ed   :  { %v1126_v10 = vpop.permute.xlu0 %1125  ;;  %v1140_v11 = vpop.permute.xlu2 %1139 }
 0x3ee   :  { %1168 = vst.msk [vmem:[%s1825_s2 + $0x30] sm:$0xff] %vm1161_vm15, %v1126_v10 }
 0x3ef   :  { %1175 = vst.msk [vmem:[%s1825_s2 + $0x68] sm:$0xff] %vm1161_vm15, %v1140_v11 }
 0x3f9   :  { %v1144_v12 = vpop.permute.xlu0 %1143 }
 0x3fa   :  { %1177 = vst.msk [vmem:[%s1825_s2 + $0x78] sm:$0xff] %vm1161_vm15, %v1144_v12 }
 0x405   :  { %v1130_v13 = vpop.permute.xlu1 %1129 }
 0x406   :  { %1170 = vst.msk [vmem:[%s1825_s2 + $0x40] sm:$0xff] %vm1161_vm15, %v1130_v13 }
 0x40d   :  { %v1142_v14 = vpop.permute.xlu1 %1141 }
 0x40e   :  { %1176 = vst.msk [vmem:[%s1825_s2 + $0x70] sm:$0xff] %vm1161_vm15, %v1142_v14 }

</bundles_post_ra>
